<compile_context>
chip_gen: v5e
topology: v5e:2x2
jax: 0.10.0
libtpu: 0.0.40
codegen_flags: <defaults>
</compile_context>

<pallas_src>
import functools

import jax
import jax.numpy as jnp
from jax import lax
from jax.experimental import pallas as pl
from jax.experimental.pallas import tpu as pltpu

_LANE = 128


def _cdiv(a, b):
    return -(-a // b)


def _round_up(x, m):
    return _cdiv(x, m) * m


def _vmem_tile_bytes(rows, cols, itemsize):
    # VMEM blocks are padded to (8 sublanes, 128 lanes); conservative estimate.
    return _round_up(max(rows, 1), 8) * _round_up(max(cols, 1), _LANE) * itemsize


def _fused_mlp_kernel(*refs, num_hidden):
    """(Linear -> ReLU) * num_hidden -> Linear(., 1) on one batch tile.

    refs = (x_ref, w0, b0, ..., w_{H-1}, b_{H-1}, w_reg, b_reg, o_ref)
    Weights/biases use constant index_maps so they stay VMEM-resident across
    every batch tile.  The final layer is computed as
        out[1, tb] = w_reg[1, D]  (contract D)  h[tb, D]
    so the single regression output per row lands on the LANE axis
    (lane-dense store), not on a width-1 lane.
    """
    x_ref = refs[0]
    o_ref = refs[-1]
    wb = refs[1:-1]

    h = x_ref[...].astype(jnp.float32)              # [tb, din]
    for l in range(num_hidden):
        w = wb[2 * l][...]                          # [d_in, d_out]
        b = wb[2 * l + 1][...]                      # [1, d_out] -> row broadcast
        h = jnp.dot(h, w, preferred_element_type=jnp.float32) + b
        h = jnp.maximum(h, 0.0)

    w_reg = wb[2 * num_hidden][...]                 # [1, d_last]
    b_reg = wb[2 * num_hidden + 1][...]             # [1, 1]
    # A @ B^T-style contraction (q @ k.T pattern): result is [1, tb] with the
    # batch on the lane axis -> unmasked, lane-dense store.
    out_row = lax.dot_general(
        w_reg, h,
        dimension_numbers=(((1,), (1,)), ((), ())),
        preferred_element_type=jnp.float32,
    ) + b_reg
    o_ref[...] = out_row.astype(o_ref.dtype)


def backprop_net_forward(params, x, *, tile_b=2048, input_stream_bf16=False):
    """Forward pass of Backprop_net as one fused Pallas kernel.

    params: list of (W [din, dout], b [dout]) -- hidden layers, then the
            regression layer whose dout is 1.
    x:      [batch, dims[0]] float32.
    Returns [batch, 1] float32.
    """
    batch, din = x.shape
    num_hidden = len(params) - 1
    w_reg, b_reg = params[-1]
    d_last = w_reg.shape[0]
    assert w_reg.shape[1] == 1, "regression layer must have a single output"

    # --- batch tiling -------------------------------------------------------
    # Lane-dense output blocks are (1, tb), so tb must be a multiple of 128.
    # Balance the tile across grid steps to limit tail padding, and make sure
    # there are >= 2 steps when possible so both v7x TensorCores get work
    # (v5e/v6e are single-TC; the extra step costs ~0.35us, negligible).
    tb_cap = max(_LANE, _round_up(tile_b, _LANE))
    num_tiles = max(1, _cdiv(batch, tb_cap))
    if num_tiles < 2 and batch > _LANE:
        num_tiles = 2
    tb = _round_up(_cdiv(batch, num_tiles), _LANE)
    padded = tb * num_tiles
    grid = (num_tiles,)

    x_in = x
    if padded != batch:
        x_in = jnp.pad(x_in, ((0, padded - batch), (0, 0)))
    if input_stream_bf16:
        # Halves the dominant HBM stream on v6e/v7x (do not use if exact f32
        # numerics are required); accumulation stays f32 inside the kernel.
        x_in = x_in.astype(jnp.bfloat16)

    # --- specs ----------------------------------------------------------------
    in_specs = [pl.BlockSpec((tb, din), lambda i: (i, 0))]
    flat_inputs = [x_in]
    weight_hbm_bytes = 0
    weight_vmem_bytes = 0
    for w, b in params[:-1]:
        d_in, d_out = w.shape
        # NOTE: weights are tiny here; with large dims you would additionally
        # mark these resident specs with pipeline_mode=pl.Buffered(1).
        in_specs.append(pl.BlockSpec((d_in, d_out), lambda i: (0, 0)))
        in_specs.append(pl.BlockSpec((1, d_out), lambda i: (0, 0)))
        flat_inputs.append(w)
        flat_inputs.append(b.reshape(1, d_out))
        weight_hbm_bytes += (w.size + b.size) * 4
        weight_vmem_bytes += (_vmem_tile_bytes(d_in, d_out, 4)
                              + _vmem_tile_bytes(1, d_out, 4))
    # Regression layer stored as a [1, d_last] row (PyTorch [out, in] layout) so
    # the last matmul directly produces the lane-dense [1, tb] result.
    in_specs.append(pl.BlockSpec((1, d_last), lambda i: (0, 0)))
    in_specs.append(pl.BlockSpec((1, 1), lambda i: (0, 0)))
    flat_inputs.append(w_reg.reshape(1, d_last))
    flat_inputs.append(b_reg.reshape(1, 1))
    weight_hbm_bytes += (w_reg.size + b_reg.size) * 4
    weight_vmem_bytes += _vmem_tile_bytes(1, d_last, 4) + _vmem_tile_bytes(1, 1, 4)

    out_spec = pl.BlockSpec((1, tb), lambda i: (0, i))
    out_shape = jax.ShapeDtypeStruct((1, padded), jnp.float32)

    # --- explicit VMEM budget (review: bound tb and tell the compiler) --------
    x_itemsize = 2 if input_stream_bf16 else 4
    max_width = max([din] + [w.shape[1] for w, _ in params])
    vmem_needed = (
        2 * _vmem_tile_bytes(tb, din, x_itemsize)   # x block, double-buffered
        + 2 * _vmem_tile_bytes(1, tb, 4)            # out block, double-buffered
        + 2 * weight_vmem_bytes                     # resident weights (conservative x2)
        + 3 * _vmem_tile_bytes(tb, max_width, 4)    # live f32 intermediates
    )
    vmem_limit = int(min(64 * 1024 * 1024, max(32 * 1024 * 1024, 2 * vmem_needed)))

    flops = 2 * padded * sum(w.shape[0] * w.shape[1] for w, _ in params)
    bytes_accessed = padded * din * x_itemsize + weight_hbm_bytes + padded * 4

    out = pl.pallas_call(
        functools.partial(_fused_mlp_kernel, num_hidden=num_hidden),
        out_shape=out_shape,
        grid=grid,
        in_specs=in_specs,
        out_specs=out_spec,
        compiler_params=pltpu.CompilerParams(
            dimension_semantics=("parallel",),
            vmem_limit_bytes=vmem_limit,
        ),
        cost_estimate=pl.CostEstimate(
            flops=flops, transcendentals=0, bytes_accessed=bytes_accessed
        ),
    )(*flat_inputs)
    return out[0, :batch].reshape(batch, 1)


def init_backprop_net_params(key, dims):
    """Deterministic init mirroring nn.Linear defaults: U(-1/sqrt(fan_in), +)."""
    params = []
    # Hidden stack: Linear(dims[d], dims[d+1]) for each consecutive pair.
    for d in range(len(dims) - 1):
        fan_in, fan_out = dims[d], dims[d + 1]
        key, kw, kb = jax.random.split(key, 3)
        bound = 1.0 / jnp.sqrt(jnp.float32(fan_in))
        w = jax.random.uniform(kw, (fan_in, fan_out), jnp.float32, -bound, bound)
        b = jax.random.uniform(kb, (fan_out,), jnp.float32, -bound, bound)
        params.append((w, b))
    # Regression layer: Linear(dims[-1], 1)
    fan_in = dims[-1]
    key, kw, kb = jax.random.split(key, 3)
    bound = 1.0 / jnp.sqrt(jnp.float32(fan_in))
    w = jax.random.uniform(kw, (fan_in, 1), jnp.float32, -bound, bound)
    b = jax.random.uniform(kb, (1,), jnp.float32, -bound, bound)
    params.append((w, b))
    return params


def reference_forward(params, x):
    *hidden, (w_reg, b_reg) = params
    for w, b in hidden:
        x = jnp.maximum(x @ w + b, 0.0)
    return x @ w_reg + b_reg


if __name__ == "__main__":
    key = jax.random.PRNGKey(0)
    dims = [16, 32, 32]          # MLP layer sizes (dims arg of Backprop_net)

    key, kp = jax.random.split(key)
    params = init_backprop_net_params(kp, dims)

    # Small single-tile case (batch < one lane tile).
    key, kx = jax.random.split(key)
    x_small = jax.random.normal(kx, (8, dims[0]), jnp.float32)
    out_small = jax.block_until_ready(backprop_net_forward(params, x_small))
    ref_small = reference_forward(params, x_small)
    assert out_small.shape == (8, 1), out_small.shape
    assert jnp.allclose(out_small, ref_small, atol=1e-5, rtol=1e-5), \
        "mismatch vs reference (small batch)"

    # Default tiling on a batch that forces >= 2 grid steps (megacore split).
    key, kx = jax.random.split(key)
    x_mid = jax.random.normal(kx, (200, dims[0]), jnp.float32)
    out_mid = jax.block_until_ready(backprop_net_forward(params, x_mid))
    ref_mid = reference_forward(params, x_mid)
    assert out_mid.shape == (200, 1), out_mid.shape
    assert jnp.allclose(out_mid, ref_mid, atol=1e-5, rtol=1e-5), \
        "mismatch vs reference (default tiling)"

    # Explicit small tile: several balanced grid steps + tail padding.
    key, kx = jax.random.split(key)
    x_big = jax.random.normal(kx, (1000, dims[0]), jnp.float32)
    out_big = jax.block_until_ready(
        backprop_net_forward(params, x_big, tile_b=256)
    )
    ref_big = reference_forward(params, x_big)
    assert out_big.shape == (1000, 1), out_big.shape
    assert jnp.allclose(out_big, ref_big, atol=1e-5, rtol=1e-5), \
        "mismatch vs reference (multi-tile)"

    print("KERNEL_OK")
</pallas_src>

<mosaic_0001>
module attributes {stable_mosaic.version = 11 : i64} {
  func.func @_fused_mlp_kernel(%arg0: i32, %arg1: memref<128x16xf32, #tpu.memory_space<vmem>>, %arg2: memref<16x32xf32, #tpu.memory_space<vmem>>, %arg3: memref<1x32xf32, #tpu.memory_space<vmem>>, %arg4: memref<32x32xf32, #tpu.memory_space<vmem>>, %arg5: memref<1x32xf32, #tpu.memory_space<vmem>>, %arg6: memref<1x32xf32, #tpu.memory_space<vmem>>, %arg7: memref<1x1xf32, #tpu.memory_space<vmem>>, %arg8: memref<1x128xf32, #tpu.memory_space<vmem>>) attributes {dimension_semantics = [#tpu.dimension_semantics<parallel>], iteration_bounds = array<i64: 1>, scalar_prefetch = 0 : i64, scratch_operands = 0 : i64, tpu.core_type = #tpu.core_type<tc>, window_params = [{transform_indices = @transform_0, window_bounds = array<i64: 128, 16>}, {pipeline_mode = #tpu.pipeline_mode<synchronous>, transform_indices = @transform_1, window_bounds = array<i64: 16, 32>}, {pipeline_mode = #tpu.pipeline_mode<synchronous>, transform_indices = @transform_2, window_bounds = array<i64: 1, 32>}, {pipeline_mode = #tpu.pipeline_mode<synchronous>, transform_indices = @transform_3, window_bounds = array<i64: 32, 32>}, {pipeline_mode = #tpu.pipeline_mode<synchronous>, transform_indices = @transform_4, window_bounds = array<i64: 1, 32>}, {pipeline_mode = #tpu.pipeline_mode<synchronous>, transform_indices = @transform_5, window_bounds = array<i64: 1, 32>}, {pipeline_mode = #tpu.pipeline_mode<synchronous>, transform_indices = @transform_6, window_bounds = array<i64: 1, 1>}, {transform_indices = @transform_7, window_bounds = array<i64: 1, 128>}]} {
    %c0 = arith.constant 0 : index
    %c0_0 = arith.constant 0 : index
    %0 = vector.load %arg1[%c0, %c0_0] : memref<128x16xf32, #tpu.memory_space<vmem>>, vector<128x16xf32>
    %c0_1 = arith.constant 0 : index
    %c0_2 = arith.constant 0 : index
    %1 = vector.load %arg2[%c0_1, %c0_2] : memref<16x32xf32, #tpu.memory_space<vmem>>, vector<16x32xf32>
    %c0_3 = arith.constant 0 : index
    %c0_4 = arith.constant 0 : index
    %2 = vector.load %arg3[%c0_3, %c0_4] : memref<1x32xf32, #tpu.memory_space<vmem>>, vector<1x32xf32>
    %cst = arith.constant dense<0.000000e+00> : vector<128x32xf32>
    %3 = tpu.matmul %0, %1, %cst {dimension_numbers = #tpu.dot_dimension_numbers<[1], [0], [0], [1], [0, 0, 1, 1], [], []>} : vector<128x16xf32>, vector<16x32xf32>, vector<128x32xf32> -> vector<128x32xf32>
    %4 = vector.broadcast %2 : vector<1x32xf32> to vector<128x32xf32>
    %5 = arith.addf %3, %4 : vector<128x32xf32>
    %cst_5 = arith.constant 0.000000e+00 : f32
    %6 = vector.broadcast %cst_5 : f32 to vector<128x32xf32>
    %7 = arith.maximumf %5, %6 : vector<128x32xf32>
    %c0_6 = arith.constant 0 : index
    %c0_7 = arith.constant 0 : index
    %8 = vector.load %arg4[%c0_6, %c0_7] : memref<32x32xf32, #tpu.memory_space<vmem>>, vector<32x32xf32>
    %c0_8 = arith.constant 0 : index
    %c0_9 = arith.constant 0 : index
    %9 = vector.load %arg5[%c0_8, %c0_9] : memref<1x32xf32, #tpu.memory_space<vmem>>, vector<1x32xf32>
    %cst_10 = arith.constant dense<0.000000e+00> : vector<128x32xf32>
    %10 = tpu.matmul %7, %8, %cst_10 {dimension_numbers = #tpu.dot_dimension_numbers<[1], [0], [0], [1], [0, 0, 1, 1], [], []>} : vector<128x32xf32>, vector<32x32xf32>, vector<128x32xf32> -> vector<128x32xf32>
    %11 = vector.broadcast %9 : vector<1x32xf32> to vector<128x32xf32>
    %12 = arith.addf %10, %11 : vector<128x32xf32>
    %cst_11 = arith.constant 0.000000e+00 : f32
    %13 = vector.broadcast %cst_11 : f32 to vector<128x32xf32>
    %14 = arith.maximumf %12, %13 : vector<128x32xf32>
    %c0_12 = arith.constant 0 : index
    %c0_13 = arith.constant 0 : index
    %15 = vector.load %arg6[%c0_12, %c0_13] : memref<1x32xf32, #tpu.memory_space<vmem>>, vector<1x32xf32>
    %c0_14 = arith.constant 0 : index
    %c0_15 = arith.constant 0 : index
    %16 = vector.load %arg7[%c0_14, %c0_15] : memref<1x1xf32, #tpu.memory_space<vmem>>, vector<1x1xf32>
    %cst_16 = arith.constant dense<0.000000e+00> : vector<1x128xf32>
    %17 = tpu.matmul %15, %14, %cst_16 {dimension_numbers = #tpu.dot_dimension_numbers<[1], [1], [0], [0], [0, 0, 1, 0], [], []>} : vector<1x32xf32>, vector<128x32xf32>, vector<1x128xf32> -> vector<1x128xf32>
    %18 = vector.broadcast %16 : vector<1x1xf32> to vector<1x128xf32>
    %19 = arith.addf %17, %18 : vector<1x128xf32>
    %c0_17 = arith.constant 0 : index
    %c0_18 = arith.constant 0 : index
    %20 = vector.load %arg8[%c0_17, %c0_18] : memref<1x128xf32, #tpu.memory_space<vmem>>, vector<1x128xf32>
    tpu.vector_store %arg8[%c0_17, %c0_18], %19 {strides = array<i32>} : memref<1x128xf32, #tpu.memory_space<vmem>>, vector<1x128xf32>,
    return
  }
  func.func @transform_0(%arg0: i32) -> (i32, i32) {
    %c0_i32 = arith.constant 0 : i32
    %c0_i32_0 = arith.constant 0 : i32
    return %arg0, %c0_i32 : i32, i32
  }
  func.func @transform_1(%arg0: i32) -> (i32, i32) {
    %c0_i32 = arith.constant 0 : i32
    %c0_i32_0 = arith.constant 0 : i32
    %c0_i32_1 = arith.constant 0 : i32
    return %c0_i32, %c0_i32_0 : i32, i32
  }
  func.func @transform_2(%arg0: i32) -> (i32, i32) {
    %c0_i32 = arith.constant 0 : i32
    %c0_i32_0 = arith.constant 0 : i32
    %c0_i32_1 = arith.constant 0 : i32
    return %c0_i32, %c0_i32_0 : i32, i32
  }
  func.func @transform_3(%arg0: i32) -> (i32, i32) {
    %c0_i32 = arith.constant 0 : i32
    %c0_i32_0 = arith.constant 0 : i32
    %c0_i32_1 = arith.constant 0 : i32
    return %c0_i32, %c0_i32_0 : i32, i32
  }
  func.func @transform_4(%arg0: i32) -> (i32, i32) {
    %c0_i32 = arith.constant 0 : i32
    %c0_i32_0 = arith.constant 0 : i32
    %c0_i32_1 = arith.constant 0 : i32
    return %c0_i32, %c0_i32_0 : i32, i32
  }
  func.func @transform_5(%arg0: i32) -> (i32, i32) {
    %c0_i32 = arith.constant 0 : i32
    %c0_i32_0 = arith.constant 0 : i32
    %c0_i32_1 = arith.constant 0 : i32
    return %c0_i32, %c0_i32_0 : i32, i32
  }
  func.func @transform_6(%arg0: i32) -> (i32, i32) {
    %c0_i32 = arith.constant 0 : i32
    %c0_i32_0 = arith.constant 0 : i32
    %c0_i32_1 = arith.constant 0 : i32
    return %c0_i32, %c0_i32_0 : i32, i32
  }
  func.func @transform_7(%arg0: i32) -> (i32, i32) {
    %c0_i32 = arith.constant 0 : i32
    %c0_i32_0 = arith.constant 0 : i32
    return %c0_i32, %arg0 : i32, i32
  }
}

</mosaic_0001>

<bundles_post_ra>
// kernel: tpu_custom_call.1
= control target key start
LH: loop header
LB: loop body
LE: loop exit
PB: predicated region body
PF: predicated region fallthrough
CT: control target
= control target key end

     0   :  { %s694_s0 = inlined_call_operand.vmem [shape: f32[128,16], index: 0, kind: input, shape index: {}]   ;;  %s695_s1 = inlined_call_operand.vmem [shape: f32[16,32], index: 1, kind: input, shape index: {}]   ;;  %s696_s2 = inlined_call_operand.vmem [shape: f32[1,32], index: 2, kind: input, shape index: {}]   ;;  %s697_s3 = inlined_call_operand.vmem [shape: f32[32,32], index: 3, kind: input, shape index: {}]   ;;  %s698_s4 = inlined_call_operand.vmem [shape: f32[1,32], index: 4, kind: input, shape index: {}]   ;;  %s699_s5 = inlined_call_operand.vmem [shape: f32[1,32], index: 5, kind: input, shape index: {}]   ;;  %s700_s6 = inlined_call_operand.<no memory space> [shape: f32[1,1], index: 6, kind: input, shape index: {}]   ;;  %s701_s7 = inlined_call_operand.hbm [shape: f32[1,128], index: 7, kind: output, shape index: {}]  }
   0x1   :  { %v12_v0 = vstv %s700_s6 }
   0x2   :  { %13 = vst [vmem:[#allocation2] sm:$0x1] %v12_v0 }
   0x3   :  { %v46_v1 = vld [vmem:[%s695_s1 + $0x8] sm:$0xff]  ;;  %v45_v2 = vld [vmem:[%s695_s1] sm:$0xff]  ;;  %vm51_vm0 = vcmask 130048  }
   0x4   :  { %114 = vmatpush.msra.mxu0 %v46_v1  ;;  %v29_v3 = vld [vmem:[%s694_s0] sm:$0xff]  ;;  %464 = vmatpush.msra.mxu3 %v46_v1 }
   0x6   :  { %115 = vmatpush.msra.mxu0 %v45_v2  ;;  %465 = vmatpush.msra.mxu3 %v45_v2 }
   0x7   :  { %14 = vsyncpa [#allocation4], 0  ;;  %415 = vmatmul.msk.f32.vlgmr.msra.gmra.mxu0 %vm51_vm0, %v29_v3  ;;  %v30_v4 = vld [vmem:[%s694_s0 + $0x8] sm:$0xff]  ;;  %v31_v5 = vld [vmem:[%s694_s0 + $0x10] sm:$0xff]  ;;  %vm189_vm1 = vcmask 261120   ;;  %s502_s22 = smov [#allocation3]  }
   0x8   :  { %v32_v6 = vld [vmem:[%s694_s0 + $0x18] sm:$0xff]  ;;  %v33_v7 = vld [vmem:[%s694_s0 + $0x20] sm:$0xff]  ;;  %v34_v8 = vld [vmem:[%s694_s0 + $0x28] sm:$0xff]  ;;  %s404_s23 = sshll.u32 %s502_s22, 4  ;;  %s406_s26 = sshll.u32 %s701_s7, 4  ;;  %s405_s23 = int_to_ptr.vmem [resolvable:$true] %s404_s23  ;;  %s407_s26 = int_to_ptr.hbm [resolvable:$true] %s406_s26 }
   0x9   :  { %v35_v9 = vld [vmem:[%s694_s0 + $0x30] sm:$0xff]  ;;  %v40_v10 = vld [vmem:[%s694_s0 + $0x58] sm:$0xff]  ;;  %v41_v13 = vld [vmem:[%s694_s0 + $0x60] sm:$0xff] }
   0xa   :  { %426 = vmatmul.msk.f32.vlgmr.msra.gmra.mxu3 %vm51_vm0, %v40_v10  ;;  %v184_v11 = vld [vmem:[%s697_s3 + $0x18] sm:$0xff]  ;;  %v37_v14 = vld [vmem:[%s694_s0 + $0x40] sm:$0xff]  ;;  %v42_v15 = vld [vmem:[%s694_s0 + $0x68] sm:$0xff] }
   0xb   :  { %250 = vmatpush.msra.mxu1 %v184_v11  ;;  %466 = vmatpush.msrb.mxu3 %v184_v11  ;;  %v36_v12 = vld [vmem:[%s694_s0 + $0x38] sm:$0xff]  ;;  %v38_v16 = vld [vmem:[%s694_s0 + $0x48] sm:$0xff]  ;;  %v43_v17 = vld [vmem:[%s694_s0 + $0x70] sm:$0xff] }
   0xc   :  { %v39_v18 = vld [vmem:[%s694_s0 + $0x50] sm:$0xff]  ;;  %v44_v19 = vld [vmem:[%s694_s0 + $0x78] sm:$0xff]  ;;  %v182_v21 = vld [vmem:[%s697_s3 + $0x8] sm:$0xff] }
   0xd   :  { %v183_v20 = vld [vmem:[%s697_s3 + $0x10] sm:$0xff]  ;;  %v181_v22 = vld [vmem:[%s697_s3] sm:$0xff] }
   0xe   :  { %251 = vmatpush.msra.mxu1 %v183_v20  ;;  %467 = vmatpush.msrb.mxu3 %v183_v20  ;;  %v631_v23 = vld [vmem:[%s696_s2] ss:$0 sm:$0xff] }
   0xf   :  { %416 = vmatmul.msk.f32.gmra.mxu0 %vm51_vm0, %v30_v4  ;;  %v474_v20 = vld [vmem:[%s698_s4] ss:$0 sm:$0xff] }
  0x10   :  { %252 = vmatpush.msra.mxu1 %v182_v21  ;;  %468 = vmatpush.msrb.mxu3 %v182_v21 }
  0x12   :  { %427 = vmatmul.msk.f32.gmra.mxu3 %vm51_vm0, %v41_v13  ;;  %253 = vmatpush.msra.mxu1 %v181_v22 }
  0x13   :  { %469 = vmatpush.msrb.mxu3 %v181_v22 }
  0x17   :  { %417 = vmatmul.msk.f32.gmra.mxu0 %vm51_vm0, %v31_v5 }
  0x1a   :  { %428 = vmatmul.msk.f32.gmra.mxu3 %vm51_vm0, %v42_v15 }
  0x1f   :  { %418 = vmatmul.msk.f32.gmra.mxu0 %vm51_vm0, %v32_v6 }
  0x22   :  { %429 = vmatmul.msk.f32.gmra.mxu3 %vm51_vm0, %v43_v17 }
  0x27   :  { %419 = vmatmul.msk.f32.gmra.mxu0 %vm51_vm0, %v33_v7 }
  0x2a   :  { %430 = vmatmul.msk.f32.gmra.mxu3 %vm51_vm0, %v44_v19 }
  0x2f   :  { %420 = vmatmul.msk.f32.gmra.mxu0 %vm51_vm0, %v34_v8 }
  0x37   :  { %421 = vmatmul.msk.f32.gmra.mxu0 %vm51_vm0, %v35_v9 }
  0x3f   :  { %422 = vmatmul.msk.f32.gmra.mxu0 %vm51_vm0, %v36_v12 }
  0x47   :  { %423 = vmatmul.msk.f32.gmra.mxu0 %vm51_vm0, %v37_v14 }
  0x4f   :  { %424 = vmatmul.msk.f32.gmra.mxu0 %vm51_vm0, %v38_v16 }
  0x57   :  { %425 = vmatmul.msk.f32.gmra.mxu0 %vm51_vm0, %v39_v18 }
  0x84   :  { %v117_v24 = vpop.f32.mrf.mxu0 }
  0x85   :  { %v118_v25 = vadd.f32 %v631_v23, %v117_v24 }
  0x87   :  { %v165_v26 = vmax.f32 %v118_v25, 0.0 }
  0x89   :  { %431 = vmatmul.msk.f32.vlgmr.msra.gmra.mxu1 %vm189_vm1, %v165_v26 }
  0x8c   :  { %v120_v27 = vpop.f32.mrf.mxu0 }
  0x8d   :  { %v121_v28 = vadd.f32 %v631_v23, %v120_v27  ;;  %v150_v53 = vpop.f32.mrf.mxu3 }
  0x8e   :  { %v151_v59 = vadd.f32 %v631_v23, %v150_v53 }
  0x8f   :  { %v166_v29 = vmax.f32 %v121_v28, 0.0 }
  0x90   :  { %v176_v60 = vmax.f32 %v151_v59, 0.0  ;;  %v319_v59 = vld [vmem:[%s699_s5] sm:$0x1] }
  0x91   :  { %432 = vmatmul.msk.f32.gmra.mxu1 %vm189_vm1, %v166_v29 }
  0x94   :  { %v123_v30 = vpop.f32.mrf.mxu0 }
  0x95   :  { %v124_v31 = vadd.f32 %v631_v23, %v123_v30  ;;  %v153_v58 = vpop.f32.mrf.mxu3 }
  0x96   :  { %v154_v61 = vadd.f32 %v631_v23, %v153_v58 }
  0x97   :  { %v167_v32 = vmax.f32 %v124_v31, 0.0 }
  0x98   :  { %v177_v63 = vmax.f32 %v154_v61, 0.0 }
  0x99   :  { %433 = vmatmul.msk.f32.gmra.mxu1 %vm189_vm1, %v167_v32 }
  0x9c   :  { %v126_v33 = vpop.f32.mrf.mxu0 }
  0x9d   :  { %v127_v34 = vadd.f32 %v631_v23, %v126_v33  ;;  %v156_v62 = vpop.f32.mrf.mxu3 }
  0x9e   :  { %v157_v0 = vadd.f32 %v631_v23, %v156_v62 }
  0x9f   :  { %v168_v35 = vmax.f32 %v127_v34, 0.0 }
  0xa0   :  { %v178_v2 = vmax.f32 %v157_v0, 0.0 }
  0xa1   :  { %434 = vmatmul.msk.f32.gmra.mxu1 %vm189_vm1, %v168_v35 }
  0xa4   :  { %v129_v36 = vpop.f32.mrf.mxu0 }
  0xa5   :  { %v130_v37 = vadd.f32 %v631_v23, %v129_v36  ;;  %v159_v1 = vpop.f32.mrf.mxu3 }
  0xa6   :  { %v160_v3 = vadd.f32 %v631_v23, %v159_v1 }
  0xa7   :  { %v169_v38 = vmax.f32 %v130_v37, 0.0 }
  0xa8   :  { %v179_v4 = vmax.f32 %v160_v3, 0.0 }
  0xa9   :  { %435 = vmatmul.msk.f32.gmra.mxu1 %vm189_vm1, %v169_v38 }
  0xac   :  { %v132_v39 = vpop.f32.mrf.mxu0 }
  0xad   :  { %v133_v40 = vadd.f32 %v631_v23, %v132_v39  ;;  %v162_v5 = vpop.f32.mrf.mxu3 }
  0xae   :  { %v163_v6 = vadd.f32 %v631_v23, %v162_v5 }
  0xaf   :  { %v170_v41 = vmax.f32 %v133_v40, 0.0 }
  0xb0   :  { %v180_v7 = vmax.f32 %v163_v6, 0.0 }
  0xb1   :  { %436 = vmatmul.msk.f32.gmra.mxu1 %vm189_vm1, %v170_v41 }
  0xb4   :  { %v135_v42 = vpop.f32.mrf.mxu0 }
  0xb5   :  { %v136_v43 = vadd.f32 %v631_v23, %v135_v42 }
  0xb7   :  { %v171_v44 = vmax.f32 %v136_v43, 0.0 }
  0xb9   :  { %437 = vmatmul.msk.f32.gmra.mxu1 %vm189_vm1, %v171_v44  ;;  %v320_v44 = vld [vmem:[#allocation2] sm:$0x1] }
  0xbc   :  { %v138_v45 = vpop.f32.mrf.mxu0 }
  0xbd   :  { %v139_v46 = vadd.f32 %v631_v23, %v138_v45  ;;  %v501_v45 = vmov 0  }
  0xbe   :  { %472 = vset.pattern.permute.xlu0 %v501_v45 }
  0xbf   :  { %v172_v47 = vmax.f32 %v139_v46, 0.0  ;;  %323 = vperm.xlu0 %472, %v320_v44  }
  0xc1   :  { %438 = vmatmul.msk.f32.gmra.mxu1 %vm189_vm1, %v172_v47 }
  0xc4   :  { %v141_v48 = vpop.f32.mrf.mxu0 }
  0xc5   :  { %v142_v49 = vadd.f32 %v631_v23, %v141_v48 }
  0xc7   :  { %v173_v50 = vmax.f32 %v142_v49, 0.0 }
  0xc9   :  { %439 = vmatmul.msk.f32.gmra.mxu1 %vm189_vm1, %v173_v50 }
  0xcc   :  { %v144_v51 = vpop.f32.mrf.mxu0 }
  0xcd   :  { %v145_v52 = vadd.f32 %v631_v23, %v144_v51 }
  0xcf   :  { %v174_v54 = vmax.f32 %v145_v52, 0.0 }
  0xd1   :  { %440 = vmatmul.msk.f32.gmra.mxu1 %vm189_vm1, %v174_v54 }
  0xd4   :  { %v147_v55 = vpop.f32.mrf.mxu0 }
  0xd5   :  { %v148_v56 = vadd.f32 %v631_v23, %v147_v55 }
  0xd7   :  { %v175_v57 = vmax.f32 %v148_v56, 0.0 }
  0xd9   :  { %441 = vmatmul.msk.f32.vlgmr.msrb.gmra.mxu3 %vm189_vm1, %v175_v57 }
  0xe1   :  { %442 = vmatmul.msk.f32.gmra.mxu3 %vm189_vm1, %v176_v60 }
  0xe9   :  { %443 = vmatmul.msk.f32.gmra.mxu3 %vm189_vm1, %v177_v63 }
  0xf1   :  { %444 = vmatmul.msk.f32.gmra.mxu3 %vm189_vm1, %v178_v2 }
  0xf9   :  { %445 = vmatmul.msk.f32.gmra.mxu3 %vm189_vm1, %v179_v4 }
 0x101   :  { %446 = vmatmul.msk.f32.gmra.mxu3 %vm189_vm1, %v180_v7 }
 0x106   :  { %v665_v8 = vpop.f32.mrf.mxu1 }
 0x107   :  { %v256_v56 = vadd.f32 %v474_v20, %v665_v8 }
 0x109   :  { %v303_v58 = vmax.f32 %v256_v56, 0.0 }
 0x10e   :  { %v258_v9 = vpop.f32.mrf.mxu1 }
 0x10f   :  { %v259_v54 = vadd.f32 %v474_v20, %v258_v9 }
 0x111   :  { %v304_v57 = vmax.f32 %v259_v54, 0.0 }
 0x116   :  { %v261_v10 = vpop.f32.mrf.mxu1 }
 0x117   :  { %v262_v52 = vadd.f32 %v474_v20, %v261_v10 }
 0x119   :  { %v305_v55 = vmax.f32 %v262_v52, 0.0 }
 0x11e   :  { %v264_v11 = vpop.f32.mrf.mxu1 }
 0x11f   :  { %v265_v50 = vadd.f32 %v474_v20, %v264_v11 }
 0x121   :  { %v306_v53 = vmax.f32 %v265_v50, 0.0 }
 0x126   :  { %v267_v14 = vpop.f32.mrf.mxu1 }
 0x127   :  { %v268_v48 = vadd.f32 %v474_v20, %v267_v14 }
 0x129   :  { %v307_v51 = vmax.f32 %v268_v48, 0.0 }
 0x12e   :  { %v270_v16 = vpop.f32.mrf.mxu1 }
 0x12f   :  { %v271_v46 = vadd.f32 %v474_v20, %v270_v16 }
 0x131   :  { %v308_v49 = vmax.f32 %v271_v46, 0.0  ;;  %v324_v60 = vpop.permute.xlu0 %323 }
 0x132   :  { %v326_v61 = vperm.slane %v324_v60, 0 }
 0x136   :  { %v273_v18 = vpop.f32.mrf.mxu1 }
 0x137   :  { %v274_v42 = vadd.f32 %v474_v20, %v273_v18 }
 0x139   :  { %v309_v47 = vmax.f32 %v274_v42, 0.0 }
 0x13e   :  { %v276_v21 = vpop.f32.mrf.mxu1 }
 0x13f   :  { %v277_v40 = vadd.f32 %v474_v20, %v276_v21 }
 0x141   :  { %v310_v43 = vmax.f32 %v277_v40, 0.0 }
 0x146   :  { %v279_v28 = vpop.f32.mrf.mxu1 }
 0x147   :  { %v280_v38 = vadd.f32 %v474_v20, %v279_v28 }
 0x149   :  { %v311_v41 = vmax.f32 %v280_v38, 0.0 }
 0x14e   :  { %v282_v35 = vpop.f32.mrf.mxu1 }
 0x14f   :  { %v283_v36 = vadd.f32 %v474_v20, %v282_v35 }
 0x151   :  { %v312_v39 = vmax.f32 %v283_v36, 0.0 }
 0x15c   :  { %v285_v12 = vpop.f32.mrf.mxu3 }
 0x15d   :  { %v286_v33 = vadd.f32 %v474_v20, %v285_v12 }
 0x15f   :  { %v313_v37 = vmax.f32 %v286_v33, 0.0 }
 0x164   :  { %v288_v13 = vpop.f32.mrf.mxu3 }
 0x165   :  { %v289_v31 = vadd.f32 %v474_v20, %v288_v13 }
 0x167   :  { %v314_v34 = vmax.f32 %v289_v31, 0.0 }
 0x16c   :  { %v291_v15 = vpop.f32.mrf.mxu3 }
 0x16d   :  { %v292_v29 = vadd.f32 %v474_v20, %v291_v15 }
 0x16f   :  { %v315_v32 = vmax.f32 %v292_v29, 0.0 }
 0x174   :  { %v294_v17 = vpop.f32.mrf.mxu3 }
 0x175   :  { %v295_v26 = vadd.f32 %v474_v20, %v294_v17 }
 0x177   :  { %v316_v30 = vmax.f32 %v295_v26, 0.0 }
 0x17c   :  { %v297_v19 = vpop.f32.mrf.mxu3 }
 0x17d   :  { %v298_v24 = vadd.f32 %v474_v20, %v297_v19 }
 0x17f   :  { %v317_v27 = vmax.f32 %v298_v24, 0.0 }
 0x184   :  { %v300_v22 = vpop.f32.mrf.mxu3 }
 0x185   :  { %v301_v23 = vadd.f32 %v474_v20, %v300_v22 }
 0x187   :  { %v318_v25 = vmax.f32 %v301_v23, 0.0 }
 0x189   :  { %447 = vmatpush.xpose.msk.msra.mxu2 %vm189_vm1, %v318_v25 }
 0x18d   :  { %448 = vmatpush.xpose.msk.msra.mxu2 %vm189_vm1, %v317_v27 }
 0x191   :  { %449 = vmatpush.xpose.msk.msra.mxu2 %vm189_vm1, %v316_v30 }
 0x195   :  { %450 = vmatpush.xpose.msk.msra.mxu2 %vm189_vm1, %v315_v32 }
 0x199   :  { %451 = vmatpush.xpose.msk.msra.mxu2 %vm189_vm1, %v314_v34 }
 0x19d   :  { %452 = vmatpush.xpose.msk.msra.mxu2 %vm189_vm1, %v313_v37 }
 0x1a1   :  { %453 = vmatpush.xpose.msk.msra.mxu2 %vm189_vm1, %v312_v39 }
 0x1a5   :  { %454 = vmatpush.xpose.msk.msra.mxu2 %vm189_vm1, %v311_v41 }
 0x1a9   :  { %455 = vmatpush.xpose.msk.msra.mxu2 %vm189_vm1, %v310_v43 }
 0x1ad   :  { %456 = vmatpush.xpose.msk.msra.mxu2 %vm189_vm1, %v309_v47 }
 0x1b1   :  { %457 = vmatpush.xpose.msk.msra.mxu2 %vm189_vm1, %v308_v49 }
 0x1b5   :  { %458 = vmatpush.xpose.msk.msra.mxu2 %vm189_vm1, %v307_v51 }
 0x1b9   :  { %459 = vmatpush.xpose.msk.msra.mxu2 %vm189_vm1, %v306_v53 }
 0x1bd   :  { %460 = vmatpush.xpose.msk.msra.mxu2 %vm189_vm1, %v305_v55 }
 0x1c1   :  { %461 = vmatpush.xpose.msk.msra.mxu2 %vm189_vm1, %v304_v57 }
 0x1c5   :  { %462 = vmatpush.xpose.msk.msra.mxu2 %vm189_vm1, %v303_v58 }
 0x1c8   :  { %463 = vmatmul.msk.f32.vlgmr.msra.gmra.mxu2 %vm189_vm1, %v319_v59 }
 0x24b   :  { %v395_v62 = vpop.f32.mrf.mxu2 }
 0x24c   :  { %v396_v63 = vadd.f32 %v395_v62, %v326_v61 }
 0x24e   :  { %398 = vst [vmem:[#allocation3] sm:$0x1] %v396_v63 }
 0x24f   :  { %409 = dma.vmem_to_hbm [thread:$0]  %s405_s23, 16, %s407_s26, [#allocation4]  }
 0x250   :  { %499 = dma.done.wait [#allocation4], 16  }
 0x251   :  { %500 = vsyncadd [#allocation4], 4294967280 }
 0x252   :  { %414 = vsyncpa [#allocation4], 1 }

</bundles_post_ra>
